<compile_context>
chip_gen: v7x
topology: tpu7x:2x2x1
jax: 0.10.0
libtpu: 0.0.40
codegen_flags: <defaults>
</compile_context>

<pallas_src>
import functools

import jax
import jax.numpy as jnp
from jax import lax
from jax.experimental import pallas as pl
from jax.experimental.pallas import tpu as pltpu


def _round_up(a: int, b: int) -> int:
    return ((a + b - 1) // b) * b


def _cdiv(a: int, b: int) -> int:
    return (a + b - 1) // b


def channel_att_kernel(x_ref, w1_ref, b1_ref, w2_ref, b2_ref, out_ref, acc_ref,
                       *, inv_hw, s_tile, last_rem, num_s):
    """Grid = (batch_blocks, spatial_tiles); the spatial axis is the reduction.

    x_ref block: (n_tile, C, s_tile).  acc_ref: (n_tile, C) fp32 accumulator.
    """
    s = pl.program_id(1)
    last = num_s - 1

    # --- init accumulator for this batch block --------------------------------
    @pl.when(s == 0)
    def _():
        acc_ref[...] = jnp.zeros_like(acc_ref)

    # --- streamed partial sum over the spatial (lane) axis ---------------------
    if last_rem == s_tile:
        # No spatial tail: every tile is fully valid (no mask emitted at all).
        acc_ref[...] += jnp.sum(x_ref[...].astype(jnp.float32), axis=-1)
    else:
        @pl.when(s != last)
        def _():
            acc_ref[...] += jnp.sum(x_ref[...].astype(jnp.float32), axis=-1)

        @pl.when(s == last)
        def _():
            # Only `last_rem` lanes of the final tile are real data; the rest of
            # the VMEM buffer is whatever the partial DMA left behind -> mask it.
            lane = lax.broadcasted_iota(jnp.int32, (1, 1, s_tile), 2)
            xf = jnp.where(lane < last_rem,
                           x_ref[...].astype(jnp.float32), 0.0)
            acc_ref[...] += jnp.sum(xf, axis=-1)

    # --- finalize: avg-pool scale, conv1(+folded BN), ReLU, conv2, sigmoid -----
    @pl.when(s == last)
    def _():
        pooled = acc_ref[...] * inv_hw                          # (n_tile, C)
        # Conv2d(C, C//4, 1) with eval-mode BN folded in: pooled @ w1f + b1f
        h = jnp.dot(pooled, w1_ref[...],
                    preferred_element_type=jnp.float32) + b1_ref[...]
        h = jnp.maximum(h, 0.0)                                 # ReLU
        # Conv2d(C//4, C, 1) + Sigmoid
        att = jnp.dot(h, w2_ref[...],
                      preferred_element_type=jnp.float32) + b2_ref[...]
        out_ref[...] = jax.nn.sigmoid(att)[:, None, :].astype(out_ref.dtype)


def channel_att(x, params, *, s_tile_max: int = 2048, n_tile_max: int = 32,
                target_block_bytes: int = 2 << 20):
    """x: (N, C, H, W) float32/bf16. Returns (N, C, 1, 1) attention map."""
    N, C, H, W = x.shape
    C4 = C // 4
    HW = H * W
    itemsize = jnp.dtype(x.dtype).itemsize

    # --- fold eval-mode BatchNorm into conv1, pre-transpose both weights ------
    # TODO(synk): PyTorch default train-mode BN would use batch statistics;
    # here we apply running-stat (inference) semantics with fixed params.
    eps = 1e-5
    scale = params["gamma"] * jax.lax.rsqrt(params["running_var"] + eps)  # (C4,)
    w1f = (params["w1"] * scale[:, None]).T.astype(jnp.float32)           # (C, C4)
    b1f = ((params["b1"] - params["running_mean"]) * scale
           + params["beta"]).reshape(1, C4).astype(jnp.float32)
    w2t = params["w2"].T.astype(jnp.float32)                              # (C4, C)
    b2 = params["b2"].reshape(1, C).astype(jnp.float32)

    # --- tiling ----------------------------------------------------------------
    # Lane (spatial) dim: use the full H*W extent if it fits the block budget
    # (full-extent blocks are always layout-legal); otherwise a multiple of 128
    # capped by s_tile_max and by the per-block byte budget.  Lane dim first.
    lane_budget = max(128, (target_block_bytes // max(1, C * itemsize))
                      // 128 * 128)
    s_cap = min(s_tile_max, lane_budget)
    s_tile = HW if HW <= s_cap else s_cap
    num_s = _cdiv(HW, s_tile)
    last_rem = HW - (num_s - 1) * s_tile          # valid lanes in the last tile

    # Batch dim: fill the remaining block-byte budget, but keep >= 2 blocks on
    # the "parallel" axis (v7x megacore) and never exceed N.
    row_bytes = C * s_tile * itemsize
    n_tile = max(1, min(n_tile_max, target_block_bytes // max(1, row_bytes)))
    if N >= 2:
        n_tile = min(n_tile, _cdiv(N, 2))
    n_tile = int(max(1, min(n_tile, N)))
    num_b = _cdiv(N, n_tile)

    x_flat = x.reshape(N, C, HW)                  # view — no pad, no copy

    block_bytes = n_tile * row_bytes
    weight_bytes = (C * C4 * 2 + C4 + C) * 4
    vmem_limit = int(min(48 << 20,
                         max(16 << 20, 4 * block_bytes + weight_bytes
                             + (4 << 20))))

    kernel = functools.partial(
        channel_att_kernel,
        inv_hw=1.0 / float(HW),
        s_tile=int(s_tile),
        last_rem=int(last_rem),
        num_s=int(num_s),
    )

    cost = pl.CostEstimate(
        flops=int(N * C * HW + 4 * N * C * C4),
        transcendentals=int(N * C),
        bytes_accessed=int(N * C * HW * itemsize + N * C * itemsize
                           + weight_bytes),
    )

    out = pl.pallas_call(
        kernel,
        out_shape=jax.ShapeDtypeStruct((N, 1, C), x.dtype),
        grid_spec=pltpu.PrefetchScalarGridSpec(
            num_scalar_prefetch=0,
            grid=(num_b, num_s),
            in_specs=[
                pl.BlockSpec((n_tile, C, s_tile), lambda b, s: (b, 0, s)),
                pl.BlockSpec((C, C4), lambda b, s: (0, 0)),
                pl.BlockSpec((1, C4), lambda b, s: (0, 0)),
                pl.BlockSpec((C4, C), lambda b, s: (0, 0)),
                pl.BlockSpec((1, C), lambda b, s: (0, 0)),
            ],
            out_specs=pl.BlockSpec((n_tile, 1, C), lambda b, s: (b, 0, 0)),
            scratch_shapes=[pltpu.VMEM((n_tile, C), jnp.float32)],
        ),
        compiler_params=pltpu.CompilerParams(
            dimension_semantics=("parallel", "arbitrary"),
            vmem_limit_bytes=vmem_limit),
        cost_estimate=cost,
    )(x_flat, w1f, b1f, w2t, b2)

    return out.reshape(N, C, 1, 1)


def init_params(key, channel):
    """Deterministic synthetic parameters matching Channel_Att.__init__ shapes."""
    c4 = channel // 4
    k1, k2, k3, k4, k5, k6 = jax.random.split(key, 6)
    params = {
        # Conv2d(channel, channel//4, 1): weight (C4, C, 1, 1) -> (C4, C)
        "w1": jax.random.normal(k1, (c4, channel), jnp.float32) * 0.1,
        "b1": jax.random.normal(k2, (c4,), jnp.float32) * 0.1,
        # BatchNorm2d(channel//4) (non-trivial affine params exercise the fold)
        "gamma": 1.0 + 0.1 * jax.random.normal(k5, (c4,), jnp.float32),
        "beta": 0.1 * jax.random.normal(k6, (c4,), jnp.float32),
        "running_mean": jnp.zeros((c4,), jnp.float32),
        "running_var": jnp.ones((c4,), jnp.float32),
        # Conv2d(channel//4, channel, 1): weight (C, C4, 1, 1) -> (C, C4)
        "w2": jax.random.normal(k3, (channel, c4), jnp.float32) * 0.1,
        "b2": jax.random.normal(k4, (channel,), jnp.float32) * 0.1,
    }
    return params


def reference(x, params):
    """Pure-JAX reference of the same forward (eval-mode BN) for checking."""
    pooled = x.astype(jnp.float32).mean(axis=(2, 3))               # (N, C)
    h = pooled @ params["w1"].T + params["b1"]
    rstd = jax.lax.rsqrt(params["running_var"] + 1e-5)
    h = (h - params["running_mean"]) * rstd * params["gamma"] + params["beta"]
    h = jnp.maximum(h, 0.0)
    att = jax.nn.sigmoid(h @ params["w2"].T + params["b2"])
    return att[:, :, None, None].astype(x.dtype)


if __name__ == "__main__":
    key = jax.random.PRNGKey(0)
    kx1, kx2, kp = jax.random.split(key, 3)

    C = 16
    params = init_params(kp, C)

    # Case 1: default tiling. HW=576 fits in one full-extent spatial tile
    # (no mask); N=2 -> two single-row batch blocks (both v7x cores get work).
    N1, H1, W1 = 2, 24, 24
    x1 = jax.random.normal(kx1, (N1, C, H1, W1), jnp.float32)
    out1 = jax.block_until_ready(channel_att(x1, params))
    ref1 = reference(x1, params)
    assert out1.shape == (N1, C, 1, 1), out1.shape
    assert jnp.allclose(out1, ref1, atol=1e-5, rtol=1e-5), float(
        jnp.max(jnp.abs(out1 - ref1)))

    # Case 2: force s_tile_max=512 so HW=576 needs 2 spatial tiles with a
    # masked 64-lane tail, and N=3 with n_tile=2 exercises a partial batch
    # block (no host-side padding anywhere).
    N2, H2, W2 = 3, 24, 24
    x2 = jax.random.normal(kx2, (N2, C, H2, W2), jnp.float32)
    out2 = jax.block_until_ready(channel_att(x2, params, s_tile_max=512))
    ref2 = reference(x2, params)
    assert out2.shape == (N2, C, 1, 1), out2.shape
    assert jnp.allclose(out2, ref2, atol=1e-5, rtol=1e-5), float(
        jnp.max(jnp.abs(out2 - ref2)))

    print("KERNEL_OK")
</pallas_src>

<mosaic_0001>
module attributes {stable_mosaic.version = 11 : i64} {
  func.func @channel_att_kernel(%arg0: i32, %arg1: i32, %arg2: memref<1x16x576xf32, #tpu.memory_space<vmem>>, %arg3: memref<16x4xf32, #tpu.memory_space<vmem>>, %arg4: memref<1x4xf32, #tpu.memory_space<vmem>>, %arg5: memref<4x16xf32, #tpu.memory_space<vmem>>, %arg6: memref<1x16xf32, #tpu.memory_space<vmem>>, %arg7: memref<1x1x16xf32, #tpu.memory_space<vmem>>, %arg8: memref<1x16xf32, #tpu.memory_space<vmem>>) attributes {dimension_semantics = [#tpu.dimension_semantics<parallel>, #tpu.dimension_semantics<arbitrary>], iteration_bounds = array<i64: 2, 1>, scalar_prefetch = 0 : i64, scratch_operands = 1 : i64, tpu.core_type = #tpu.core_type<tc>, window_params = [{transform_indices = @transform_0, window_bounds = array<i64: 1, 16, 576>}, {pipeline_mode = #tpu.pipeline_mode<synchronous>, transform_indices = @transform_1, window_bounds = array<i64: 16, 4>}, {pipeline_mode = #tpu.pipeline_mode<synchronous>, transform_indices = @transform_2, window_bounds = array<i64: 1, 4>}, {pipeline_mode = #tpu.pipeline_mode<synchronous>, transform_indices = @transform_3, window_bounds = array<i64: 4, 16>}, {pipeline_mode = #tpu.pipeline_mode<synchronous>, transform_indices = @transform_4, window_bounds = array<i64: 1, 16>}, {transform_indices = @transform_5, window_bounds = array<i64: 1, 1, 16>}]} {
    %c0_i32 = arith.constant 0 : i32
    %0 = arith.cmpi eq, %arg1, %c0_i32 : i32
    %1 = arith.extui %0 : i1 to i32
    %c0_i32_0 = arith.constant 0 : i32
    %2 = arith.cmpi ne, %1, %c0_i32_0 : i32
    scf.if %2 {
      %cst_9 = arith.constant 0.000000e+00 : f32
      %11 = vector.broadcast %cst_9 : f32 to vector<1x16xf32>
      %c0_10 = arith.constant 0 : index
      %c0_11 = arith.constant 0 : index
      %12 = vector.load %arg8[%c0_10, %c0_11] : memref<1x16xf32, #tpu.memory_space<vmem>>, vector<1x16xf32>
      tpu.vector_store %arg8[%c0_10, %c0_11], %11 {strides = array<i32>} : memref<1x16xf32, #tpu.memory_space<vmem>>, vector<1x16xf32>,
    } else {
    }
    %c0 = arith.constant 0 : index
    %c0_1 = arith.constant 0 : index
    %3 = vector.load %arg8[%c0, %c0_1] : memref<1x16xf32, #tpu.memory_space<vmem>>, vector<1x16xf32>
    %c0_2 = arith.constant 0 : index
    %c0_3 = arith.constant 0 : index
    %c0_4 = arith.constant 0 : index
    %4 = vector.load %arg2[%c0_2, %c0_3, %c0_4] : memref<1x16x576xf32, #tpu.memory_space<vmem>>, vector<1x16x576xf32>
    %cst = arith.constant dense<0.000000e+00> : vector<1x16xf32>
    %5 = vector.multi_reduction <add>, %4, %cst [2] : vector<1x16x576xf32> to vector<1x16xf32>
    %6 = arith.addf %3, %5 : vector<1x16xf32>
    %c0_5 = arith.constant 0 : index
    %c0_6 = arith.constant 0 : index
    %7 = vector.load %arg8[%c0_5, %c0_6] : memref<1x16xf32, #tpu.memory_space<vmem>>, vector<1x16xf32>
    tpu.vector_store %arg8[%c0_5, %c0_6], %6 {strides = array<i32>} : memref<1x16xf32, #tpu.memory_space<vmem>>, vector<1x16xf32>,
    %c0_i32_7 = arith.constant 0 : i32
    %8 = arith.cmpi eq, %arg1, %c0_i32_7 : i32
    %9 = arith.extui %8 : i1 to i32
    %c0_i32_8 = arith.constant 0 : i32
    %10 = arith.cmpi ne, %9, %c0_i32_8 : i32
    scf.if %10 {
      %c0_9 = arith.constant 0 : index
      %c0_10 = arith.constant 0 : index
      %11 = vector.load %arg8[%c0_9, %c0_10] : memref<1x16xf32, #tpu.memory_space<vmem>>, vector<1x16xf32>
      %cst_11 = arith.constant 0.00173611112 : f32
      %12 = vector.broadcast %cst_11 : f32 to vector<1x16xf32>
      %13 = arith.mulf %11, %12 : vector<1x16xf32>
      %c0_12 = arith.constant 0 : index
      %c0_13 = arith.constant 0 : index
      %14 = vector.load %arg3[%c0_12, %c0_13] : memref<16x4xf32, #tpu.memory_space<vmem>>, vector<16x4xf32>
      %cst_14 = arith.constant dense<0.000000e+00> : vector<1x4xf32>
      %15 = tpu.matmul %13, %14, %cst_14 {dimension_numbers = #tpu.dot_dimension_numbers<[1], [0], [0], [1], [0, 0, 1, 1], [], []>} : vector<1x16xf32>, vector<16x4xf32>, vector<1x4xf32> -> vector<1x4xf32>
      %c0_15 = arith.constant 0 : index
      %c0_16 = arith.constant 0 : index
      %16 = vector.load %arg4[%c0_15, %c0_16] : memref<1x4xf32, #tpu.memory_space<vmem>>, vector<1x4xf32>
      %17 = arith.addf %15, %16 : vector<1x4xf32>
      %cst_17 = arith.constant 0.000000e+00 : f32
      %18 = vector.broadcast %cst_17 : f32 to vector<1x4xf32>
      %19 = arith.maximumf %17, %18 : vector<1x4xf32>
      %c0_18 = arith.constant 0 : index
      %c0_19 = arith.constant 0 : index
      %20 = vector.load %arg5[%c0_18, %c0_19] : memref<4x16xf32, #tpu.memory_space<vmem>>, vector<4x16xf32>
      %cst_20 = arith.constant dense<0.000000e+00> : vector<1x16xf32>
      %21 = tpu.matmul %19, %20, %cst_20 {dimension_numbers = #tpu.dot_dimension_numbers<[1], [0], [0], [1], [0, 0, 1, 1], [], []>} : vector<1x4xf32>, vector<4x16xf32>, vector<1x16xf32> -> vector<1x16xf32>
      %c0_21 = arith.constant 0 : index
      %c0_22 = arith.constant 0 : index
      %22 = vector.load %arg6[%c0_21, %c0_22] : memref<1x16xf32, #tpu.memory_space<vmem>>, vector<1x16xf32>
      %23 = arith.addf %21, %22 : vector<1x16xf32>
      %24 = arith.negf %23 : vector<1x16xf32>
      %25 = math.exp %24 : vector<1x16xf32>
      %cst_23 = arith.constant 1.000000e+00 : f32
      %26 = vector.broadcast %cst_23 : f32 to vector<1x16xf32>
      %27 = arith.addf %26, %25 : vector<1x16xf32>
      %28 = arith.divf %26, %27 : vector<1x16xf32>
      %29 = vector.shape_cast %28 : vector<1x16xf32> to vector<1x1x16xf32>
      %c0_24 = arith.constant 0 : index
      %c0_25 = arith.constant 0 : index
      %c0_26 = arith.constant 0 : index
      %30 = vector.load %arg7[%c0_24, %c0_25, %c0_26] : memref<1x1x16xf32, #tpu.memory_space<vmem>>, vector<1x1x16xf32>
      tpu.vector_store %arg7[%c0_24, %c0_25, %c0_26], %29 {strides = array<i32>} : memref<1x1x16xf32, #tpu.memory_space<vmem>>, vector<1x1x16xf32>,
    } else {
    }
    return
  }
  func.func @transform_0(%arg0: i32, %arg1: i32) -> (i32, i32, i32) {
    %c0_i32 = arith.constant 0 : i32
    %c0_i32_0 = arith.constant 0 : i32
    return %arg0, %c0_i32, %arg1 : i32, i32, i32
  }
  func.func @transform_1(%arg0: i32, %arg1: i32) -> (i32, i32) {
    %c0_i32 = arith.constant 0 : i32
    %c0_i32_0 = arith.constant 0 : i32
    %c0_i32_1 = arith.constant 0 : i32
    return %c0_i32, %c0_i32_0 : i32, i32
  }
  func.func @transform_2(%arg0: i32, %arg1: i32) -> (i32, i32) {
    %c0_i32 = arith.constant 0 : i32
    %c0_i32_0 = arith.constant 0 : i32
    %c0_i32_1 = arith.constant 0 : i32
    return %c0_i32, %c0_i32_0 : i32, i32
  }
  func.func @transform_3(%arg0: i32, %arg1: i32) -> (i32, i32) {
    %c0_i32 = arith.constant 0 : i32
    %c0_i32_0 = arith.constant 0 : i32
    %c0_i32_1 = arith.constant 0 : i32
    return %c0_i32, %c0_i32_0 : i32, i32
  }
  func.func @transform_4(%arg0: i32, %arg1: i32) -> (i32, i32) {
    %c0_i32 = arith.constant 0 : i32
    %c0_i32_0 = arith.constant 0 : i32
    %c0_i32_1 = arith.constant 0 : i32
    return %c0_i32, %c0_i32_0 : i32, i32
  }
  func.func @transform_5(%arg0: i32, %arg1: i32) -> (i32, i32, i32) {
    %c0_i32 = arith.constant 0 : i32
    %c0_i32_0 = arith.constant 0 : i32
    %c0_i32_1 = arith.constant 0 : i32
    return %arg0, %c0_i32, %c0_i32_0 : i32, i32, i32
  }
}

</mosaic_0001>

<bundles_post_ra>
// kernel: tpu_custom_call.1
= control target key start
LH: loop header
LB: loop body
LE: loop exit
PB: predicated region body
PF: predicated region fallthrough
CT: control target
= control target key end

     0   :  { %10 = vsyncpa [#allocation4], 0  ;;  %s1239_s0 = inlined_call_operand.hbm [shape: f32[2,16,576], index: 0, kind: input, shape index: {}]   ;;  %s1240_s1 = inlined_call_operand.vmem [shape: f32[16,4], index: 1, kind: input, shape index: {}]   ;;  %s1241_s2 = inlined_call_operand.vmem [shape: f32[1,4], index: 2, kind: input, shape index: {}]   ;;  %s1242_s3 = inlined_call_operand.vmem [shape: f32[4,16], index: 3, kind: input, shape index: {}]   ;;  %s1243_s4 = inlined_call_operand.vmem [shape: f32[1,16], index: 4, kind: input, shape index: {}]   ;;  %s1244_s5 = inlined_call_operand.hbm [shape: f32[2,1,16], index: 5, kind: output, shape index: {}]  }
   0x1   :  { %12 = vsyncpa [#allocation4 + $0x1], 0 }
   0x2   :  { %13 = vsyncpa [#allocation5], 0 }
   0x3   :  { %15 = vsyncpa [#allocation5 + $0x1], 0  ;;  %s1016_s18 = smov 0   ;;  %s1018_s19 = smov 0  }
   0x4   :  { %s1020_s20 = smov 0   ;;  %s1022_s21 = smov 0  }
   0x5   :  { %s1024_s22 = smov 0   ;;  %s1026_s23 = smov 0  }
   0x6 LB: > { %s752_s24 = sadd.s32 4294967295, %s975_s23   ;;  %s753_s25 = sadd.s32 4294967294, %s975_s23   ;;  %s975_s23 = sphi %s1026_s23, %s21_s23   ;;  %s971_s22 = sphi %s1024_s22, %s1259_s22   ;;  %s967_s21 = sphi %s1022_s21, %s1258_s21   ;;  %s963_s20 = sphi %s1020_s20, %s1257_s20   ;;  %s959_s19 = sphi %s1018_s19, %s1256_s19   ;;  %s955_s18 = sphi %s1016_s18, %s1255_s18  }
   0x7   : > { %s33_s26 = sadd.s32 1, %s971_s22  ;;  %s42_s27 = sadd.s32 1, %s963_s20 }
   0x8   : > { %p35_p0 = scmp.ge.s32.totalorder %s33_s26, 2  ;;  %p49_p1 = scmp.ne.s32.totalorder %s963_s20, %s959_s19 }
   0x9   : > { %p50_p2 = scmp.eq.s32.totalorder %s975_s23, 0  ;;  %p55_p3 = scmp.ne.s32.totalorder %s959_s19, %s955_s18 }
   0xa   : > { %s1261_s26 = smov (%p35_p0, %s33_s26), 0  ;;  %p56_p5 = scmp.eq.s32.totalorder %s752_s24, 0 }
   0xb   : > { %p1057_p4 = por %p50_p2, %p49_p1  ;;  %s37_s29 = ssub.s32 %s971_s22, %s1261_s26 }
   0xc   : > { %p163_p6 = scmp.eq.s32.totalorder %s752_s24, 1  ;;  %p40_p7 = scmp.eq.s32.totalorder %s37_s29, 0 }
   0xd   : > { %p1063_p8 = por %p56_p5, %p55_p3  ;;  %p169_p10 = scmp.eq.s32.totalorder %s753_s25, 1 }
   0xe   : > { %p1067_p9 = por %p163_p6, %p49_p1  ;;  %p800_p13 = scmp.lt.s32.totalorder %s975_s23, 2 }
   0xf   : > { %s1072_s7 = scalar_select %p40_p7, %s963_s20, %s42_s27  }
  0x10   : > { %s1248_s6 = scalar_select %p1067_p9, 1, 0 }
  0x11   : > { %p1074_p11 = por %p169_p10, %p55_p3  ;;  %s201_s9 = sand.u32 1, %s963_s20  }
  0x12   : > { %s785_s10 = smul.u32 80, %s201_s9  ;;  %p1084_p0 = pnand %p800_p13, %p1057_p4 }
  0x13   : > { %s1249_s8 = scalar_select %p1074_p11, 1, 0 }
  0x14   : > { %s786_s11 = smul.u32 1280, %s971_s22  ;;  %s205_s16 = scalar_lea.vmem [#allocation3], %s785_s10 }
  0x15   : > { %s214_s17 = sshll.u32 %s205_s16, 4  ;;  %s1096_s24 = scalar_lea.sflag [#allocation4], %s201_s9  ;;  %s1093_s17 = int_to_ptr.vmem [resolvable:$true] %s214_s17 }
  0x16   : > { %s1091_s15 = scalar_lea.hbm %s1239_s0, %s786_s11  ;;  %p865_p3 = pneg %p1084_p0 }
  0x17   : > { %s863_s25 = scalar_lea.hbm %s1091_s15, 1280  ;;  %s868_s29 = scalar_lea.hbm %s1239_s0, 2560 }
  0x18   : > { %p864_p2 = scmp.ne.s32.totalorder %s1091_s15, %s863_s25  ;;  %p869_p6 = scmp.lt.u32.totalorder %s1091_s15, %s1239_s0 }
  0x19   : > { %p870_p7 = scmp.lt.u32.totalorder %s868_s29, %s863_s25  ;;  %p872_p13 = scmp.lt.u32.totalorder %s863_s25, %s1091_s15 }
  0x1a   : > { %p866_p4 = pnand %p865_p3, %p864_p2 }
  0x1b   : > { %p871_p10 = por %p870_p7, %p869_p6 }
  0x1c   : > { %p867_p5 = pneg %p866_p4 }
  0x1d   : > { %p873_p12 = por %p872_p13, %p871_p10 }
  0x1f   : > { %p874_p1 = pnand %p873_p12, %p867_p5 }
  0x21   : > { %877 = shalt.err (!%p874_p1)
}
  0x22   : > { %s878_s9 = scalar_lea.vmem %s1093_s17, 1280  ;;  %s977_s13 = smov [#allocation3]  }
  0x23   : > { %p879_p2 = scmp.ne.s32.totalorder %s1093_s17, %s878_s9  ;;  %s883_s14 = sshll.u32 %s977_s13, 4  ;;  %s884_s14 = int_to_ptr.vmem [resolvable:$false] %s883_s14 }
  0x24   : > { %s885_s16 = scalar_lea.vmem %s884_s14, 2560  ;;  %p886_p9 = scmp.lt.s32.totalorder %s1093_s17, %s884_s14 }
  0x25   : > { %p881_p4 = pnand %p879_p2, %p865_p3  ;;  %p887_p6 = scmp.lt.s32.totalorder %s885_s16, %s878_s9 }
  0x27   : > { %p882_p11 = pneg %p881_p4  ;;  %p888_p7 = por %p887_p6, %p886_p9 }
  0x29   : > { %p889_p10 = pnand %p888_p7, %p882_p11 }
  0x2b   : > { %892 = shalt.err (!%p889_p10)
}
  0x2c   : > { %s978_s25 = smov 640   ;;  %s979_s27 = smov 40  }
  0x2d   : > { %795 = dma.hbm_to_vmem [thread:$0]  (!%p1084_p0), %s1091_s15, 1280, %s1093_s17, %s1096_s24, %s978_s25, %s978_s25, %s979_s27  }
  0x2e   : > { %p222_p12 = scmp.lt.s32.totalorder %s975_s23, 3  ;;  %p1251_p1 = scmp.ge.s32.totalorder %s975_s23, 1 }
  0x30   : > { %p223_p3 = pnand %p1251_p1, %p222_p12 }
  0x31   : > { %s1128_s28 = sand.u32 (!%p223_p3), 1, %s959_s19  }
  0x32   : > { %226 = sbr.rel (%p223_p3) target bundleno = 845 (0x34d), region = 40  ;;  %s229_s11 = scalar_lea.sflag (!%p223_p3), [#allocation4], %s1128_s28 }
  0x33   : > { %s787_s29 = smul.u32 (!%p223_p3), 80, %s1128_s28 }
  0x35   : > { %s232_s10 = scalar_lea.vmem (!%p223_p3), [#allocation3], %s787_s29 }
  0x39   : > { %946 = dma.done.wait (%p1063_p8), %s229_s11, 1280  }
  0x3a   : > { %948 = vsyncadd (%p1063_p8), %s229_s11, 4294966016  ;;  %v266_v0 = vld [vmem:[%s232_s10] sm:$0xff]  ;;  %v267_v1 = vld [vmem:[%s232_s10 + $0x8] sm:$0xff]  ;;  %vm279_vm0 = vcmask 523264   ;;  %v980_v20 = vmov 0   ;;  %v293_v21 = vlaneseq  ;;  %vm263_vm1 = vcmask 122880  }
  0x3b   : > { %v268_v2 = vld [vmem:[%s232_s10 + $0x10] sm:$0xff]  ;;  %v270_v3 = vld [vmem:[%s232_s10 + $0x20] sm:$0xff]  ;;  %v276_v4 = vadd.f32 %v267_v1, %v266_v0  ;;  %v271_v5 = vld [vmem:[%s232_s10 + $0x28] sm:$0xff]  ;;  %857 = vset.pattern.permute.xlu1 %v980_v20  ;;  %858 = vset.pattern.permute.xlu0 %v980_v20  ;;  %v981_v22 = vmov 1966171168   ;;  %vm984_vm2 = vmmov 0  }
  0x3c   : > { %v269_v6 = vld [vmem:[%s232_s10 + $0x18] sm:$0xff]  ;;  %v272_v7 = vld [vmem:[%s232_s10 + $0x30] sm:$0xff]  ;;  %v275_v10 = vld [vmem:[%s232_s10 + $0x48] sm:$0xff]  ;;  %v280_v12 = vsel %vm279_vm0, %v270_v3, 0.0  ;;  %v362_v23 = vunpack.c.l.s4 %v981_v22  ;;  %v1137_v24 = vshrl.u32 %v293_v21, 7  ;;  %v462_v20 = vand.u32 127, %v293_v21 }
  0x3d   : > { %v273_v8 = vld [vmem:[%s232_s10 + $0x38] sm:$0xff]  ;;  %v277_v9 = vadd.f32 %v276_v4, %v268_v2  ;;  %v284_v11 = vadd.f32 %v272_v7, %v271_v5  ;;  %v274_v13 = vld [vmem:[%s232_s10 + $0x40] sm:$0xff]  ;;  %v287_v16 = vsel %vm279_vm0, %v275_v10, 0.0  ;;  %vm472_vm3 = vcmask 130112   ;;  %s762_s27 = sshll.u32 %s967_s21, 4  ;;  %s257_s29 = scalar_lea.vmem [#allocation6], %s1128_s28 }
  0x3e   : > { %v363_v25 = vunpack.c.0.s8 %v362_v23  ;;  %v295_v26 = vsub.s32 0, %v1137_v24  ;;  %v299_v27 = vsub.s32 1, %v1137_v24  ;;  %v303_v28 = vsub.s32 2, %v1137_v24  ;;  %s675_s11 = sshll.u32 %s257_s29, 4  ;;  %s1189_s12 = scalar_lea.hbm %s1244_s5, %s762_s27  ;;  %s1191_s11 = int_to_ptr.vmem [resolvable:$true] %s675_s11 }
  0x3f   : > { %v278_v14 = vadd.f32 %v277_v9, %v269_v6  ;;  %v285_v15 = vadd.f32 %v284_v11, %v273_v8  ;;  %v307_v29 = vsub.s32 3, %v1137_v24  ;;  %v311_v30 = vsub.s32 4, %v1137_v24  ;;  %s663_s15 = scalar_lea.sflag [#allocation5], %s1128_s28  ;;  %s893_s17 = scalar_lea.vmem %s1191_s11, 16 }
  0x40   : > { %v315_v31 = vsub.s32 5, %v1137_v24  ;;  %v319_v32 = vsub.s32 6, %v1137_v24  ;;  %v323_v33 = vsub.s32 7, %v1137_v24  ;;  %v1148_v35 = vsub.s32 %v363_v25, %v1137_v24  ;;  %p894_p8 = scmp.ne.s32.totalorder %s1191_s11, %s893_s17  ;;  %p1252_p9 = scmp.ne.s32.totalorder %s1248_s6, 0 }
  0x41   : > { %v281_v17 = vadd.f32 %v280_v12, %v278_v14  ;;  %v286_v18 = vadd.f32 %v285_v15, %v274_v13  ;;  %v982_v15 = vmov 0.0   ;;  %v467_v22 = vadd.s32 4294967288, %v462_v20  ;;  %s985_s21 = smov [#allocation6]  }
  0x42   : > { %264 = vst.msk [vmem:[#allocation2] sm:$0x1] %vm263_vm1, %v982_v15  ;;  %777 = vmatprep.subr.mxu1 %v982_v15  ;;  %774 = vmatprep.mubr.msk.f32.mxu0 %vm984_vm2, %v982_v15  ;;  %v465_v25 = vsub.s32 %v462_v20, %v1137_v24  ;;  %vm500_vm4 = vcmask 130048   ;;  %vm581_vm5 = vcmask 1043456   ;;  %vm577_vm6 = vcmask 31744   ;;  %p895_p11 = pnand %p894_p8, %p1252_p9  ;;  %s897_s24 = sshll.u32 %s985_s21, 4  ;;  %s898_s24 = int_to_ptr.vmem [resolvable:$false] %s897_s24 }
  0x43   : > { %282 = vadd.xlane.f32.xlu0 %v281_v17  ;;  %v288_v19 = vadd.f32 %v287_v16, %v286_v18  ;;  %v497_v16 = vld [vmem:[%s1240_s1] sm:$0xff]  ;;  %v498_v17 = vld [vmem:[%s1240_s1 + $0x8] sm:$0xff]  ;;  %v983_v18 = vmov 0.0|0.0   ;;  %779 = vmatprep.mubr.msk.f32.mxu1 %vm984_vm2, %v982_v15  ;;  %s899_s9 = scalar_lea.vmem %s898_s24, 32  ;;  %p900_p5 = scmp.lt.s32.totalorder %s1191_s11, %s898_s24 }
  0x44   : > { %782 = vmatprep.subr.bf16.mxu0 %v983_v18  ;;  %p896_p0 = pneg %p895_p11  ;;  %p901_p13 = scmp.lt.s32.totalorder %s899_s9, %s893_s17 }
  0x46   : > { %p902_p2 = por %p901_p13, %p900_p5 }
  0x47   : > { %289 = vadd.xlane.f32.xlu0 %v288_v19  ;;  %v783_v19 = vpack.c.bf16 %v498_v17, %v497_v16 }
  0x48   : > { %p903_p4 = pnand %p902_p2, %p896_p0 }
  0x49   : > { %784 = vmatpush3.bf16.msra.mxu0 %v783_v19 }
  0xd0   : > { %v283_v34 = vpop.xlane.xlu0 %282 }
  0xd1   : > { %v296_v36 = vrot.slane %v283_v34, %v295_v26  ;;  %v300_v37 = vrot.slane %v283_v34, %v299_v27  ;;  %v304_v38 = vrot.slane %v283_v34, %v303_v28  ;;  %v308_v39 = vrot.slane %v283_v34, %v307_v29 }
  0xd2   : > { %v312_v40 = vrot.slane %v283_v34, %v311_v30  ;;  %v316_v41 = vrot.slane %v283_v34, %v315_v31  ;;  %v320_v42 = vrot.slane %v283_v34, %v319_v32  ;;  %v324_v43 = vrot.slane %v283_v34, %v323_v33 }
  0xd3   : > { %v357_v44 = vcombine.low %v296_v36, %v300_v37  ;;  %v358_v45 = vcombine.low %v304_v38, %v308_v39  ;;  %v499_v37 = vld [vmem:[%s1241_s2] sm:$0x1] }
  0xd4   : > { %v290_v46 = vpop.xlane.xlu0 %289  ;;  %v359_v47 = vcombine.low %v312_v40, %v316_v41  ;;  %v360_v48 = vcombine.low %v320_v42, %v324_v43  ;;  %v576_v41 = vld [vmem:[%s1243_s4] sm:$0x1] }
  0xd5   : > { %v367_v49 = vrot.slane %v357_v44, %v1148_v35  ;;  %v374_v50 = vrot.slane %v358_v45, %v1148_v35  ;;  %v328_v51 = vrot.slane %v290_v46, %v295_v26  ;;  %v332_v52 = vrot.slane %v290_v46, %v299_v27 }
  0xd6   : > { %v381_v53 = vrot.slane %v359_v47, %v1148_v35  ;;  %v388_v54 = vrot.slane %v360_v48, %v1148_v35  ;;  %v336_v55 = vrot.slane %v290_v46, %v303_v28  ;;  %v340_v56 = vrot.slane %v290_v46, %v307_v29 }
  0xd7   : > { %v389_v57 = vcombine.low %v367_v49, %v374_v50  ;;  %v344_v58 = vrot.slane %v290_v46, %v311_v30  ;;  %v348_v59 = vrot.slane %v290_v46, %v315_v31  ;;  %v352_v60 = vrot.slane %v290_v46, %v319_v32  ;;  %v265_v32 = vld [vmem:[#allocation2] sm:$0x1] }
  0xd8   : > { %v390_v61 = vcombine.low %v381_v53, %v388_v54  ;;  %v356_v62 = vrot.slane %v290_v46, %v323_v33  ;;  %v406_v63 = vcombine.low %v328_v51, %v332_v52  ;;  %v407_v0 = vcombine.low %v336_v55, %v340_v56 }
  0xd9   : > { %v397_v1 = vrot.slane %v389_v57, %v1148_v35  ;;  %v408_v2 = vcombine.low %v344_v58, %v348_v59  ;;  %v470_v26 = vsub.s32 %v467_v22, %v1137_v24  ;;  %v575_v24 = vld [vmem:[%s1242_s3] sm:$0xf] }
  0xda   : > { %v404_v3 = vrot.slane %v390_v61, %v1148_v35  ;;  %v409_v4 = vcombine.low %v352_v60, %v356_v62  ;;  %v416_v5 = vrot.slane %v406_v63, %v1148_v35  ;;  %v423_v6 = vrot.slane %v407_v0, %v1148_v35  ;;  %778 = vmatpush3.msk.msra.mxu1 %vm581_vm5, %v575_v24 }
  0xdb   : > { %v430_v7 = vrot.slane %v408_v2, %v1148_v35 }
  0xdc   : > { %v405_v8 = vcombine.low %v397_v1, %v404_v3  ;;  %v437_v9 = vrot.slane %v409_v4, %v1148_v35  ;;  %v438_v10 = vcombine.low %v416_v5, %v423_v6 }
  0xde   : > { %456 = vperm.xlu1 %857, %v405_v8   ;;  %v439_v11 = vcombine.low %v430_v7, %v437_v9  ;;  %v446_v12 = vrot.slane %v438_v10, %v1148_v35 }
  0xe0   : > { %v453_v13 = vrot.slane %v439_v11, %v1148_v35 }
  0xe2   : > { %v454_v14 = vcombine.low %v446_v12, %v453_v13 }
  0xe4   : > { %459 = vperm.xlu1 %857, %v454_v14  }
 0x15d   : > { %v457_v23 = vpop.permute.xlu1 %456 }
 0x15e   : > { %v466_v28 = vrot.slane %v457_v23, %v465_v25 }
 0x163   : > { %v460_v27 = vpop.permute.xlu1 %459 }
 0x164   : > { %v471_v29 = vrot.slane %v460_v27, %v470_v26 }
 0x166   : > { %v473_v30 = vsel %vm472_vm3, %v471_v29, %v466_v28 }
 0x167   : > { %v480_v31 = vrot.slane %v473_v30, %v1148_v35 }
 0x169   : > { %v487_v33 = vrot.slane %v480_v31, %v1148_v35 }
 0x16b   : > { %v489_v34 = vadd.f32 %v487_v33, %v265_v32 }
 0x16d   : > { %491 = vst.msk [vmem:[#allocation2] sm:$0x1] %vm263_vm1, %v489_v34 }
 0x174   : > { %v495_v21 = vld [vmem:[#allocation2] sm:$0x1] }
 0x175   : > { %v496_v36 = vmul.f32 0.0017361111, %v495_v21 }
 0x177   : > { %775 = vmatmul.mubr.msk.f32.vlgmr.msra.gmra.mrb[0].mxu0 %vm500_vm4, %v496_v36 }
 0x24a   : > { %v570_v38 = vpop.f32.mrb[0].mxu0 }
 0x24b   : > { %v571_v35 = vadd.f32 %v570_v38, %v499_v37  ;;  %v776_v39 = vpop.f32.mrb[1].mxu0 }
 0x24d   : > { %v574_v40 = vmax.f32 %v571_v35, 0.0 }
 0x24f   : > { %780 = vmatmul.mubr.msk.f32.vlgmr.msra.gmra.mrb[0].mxu1 %vm577_vm6, %v574_v40 }
 0x322   : > { %v651_v42 = vpop.f32.mrb[0].mxu1 }
 0x323   : > { %v652_v43 = vadd.f32 %v651_v42, %v576_v41  ;;  %v781_v44 = vpop.f32.mrb[1].mxu1 }
 0x325   : > { %v761_v45 = vmul.f32 -1.442695, %v652_v43 }
 0x327   : > { %859 = vpow2.f32 %v761_v45 }
 0x331   : > { %v860_v46 = vpop.eup %859 }
 0x332   : > { %v658_v47 = vadd.f32 1.0, %v860_v46 }
 0x334   : > { %861 = vrcp.f32 %v658_v47 }
 0x33e   : > { %v862_v48 = vpop.eup %861 }
 0x33f   : > { %661 = vst.msk [vmem:[%s257_s29] sm:$0x1] %vm263_vm1, %v862_v48 }
 0x340   : > { %906 = shalt.err (!%p903_p4)
}
 0x341   : > { %s907_s28 = scalar_lea.hbm %s1189_s12, 16  ;;  %s911_s16 = scalar_lea.hbm %s1244_s5, 32 }
 0x342   : > { %p908_p6 = scmp.ne.s32.totalorder %s1189_s12, %s907_s28  ;;  %p912_p12 = scmp.lt.u32.totalorder %s1189_s12, %s1244_s5 }
 0x343   : > { %p913_p1 = scmp.lt.u32.totalorder %s911_s16, %s907_s28  ;;  %p915_p8 = scmp.lt.u32.totalorder %s907_s28, %s1189_s12 }
 0x344   : > { %p909_p7 = pnand %p908_p6, %p1252_p9 }
 0x345   : > { %p914_p3 = por %p913_p1, %p912_p12 }
 0x346   : > { %p910_p10 = pneg %p909_p7 }
 0x347   : > { %p916_p11 = por %p915_p8, %p914_p3 }
 0x349   : > { %p917_p0 = pnand %p916_p11, %p910_p10 }
 0x34b   : > { %920 = shalt.err (!%p917_p0)
}
 0x34c   : > { %790 = dma.vmem_to_hbm [thread:$0]  (%p1252_p9), %s1191_s11, 16, %s1189_s12, %s663_s15  }
 0x34d PF: > { %s687_s29 = sand.u32 1, %s955_s18   ;;  %p1253_p5 = scmp.ne.s32.totalorder %s1249_s8, 0 }
 0x34e   : > { %p1254_p13 = scmp.ge.s32.totalorder %s975_s23, 2  ;;  %s688_s10 = scalar_lea.sflag [#allocation5], %s687_s29 }
 0x350   : > { %p797_p2 = pnand %p1254_p13, %p1253_p5 }
 0x352   : > { %950 = dma.done.wait (!%p797_p2), %s688_s10, 16  }
 0x353   : > { %952 = vsyncadd (!%p797_p2), %s688_s10, 4294967280  ;;  %s21_s23 = sadd.s32 1, %s975_s23   ;;  %s1255_s18 = smov %s959_s19 }
 0x354   : > { %p18_p4 = scmp.ge.s32.totalorder %s21_s23, 4   ;;  %s1256_s19 = smov %s963_s20 }
 0x355   : > { %s1257_s20 = smov %s1072_s7  ;;  %s1258_s21 = smov %s971_s22 }
 0x356   : > { %s1259_s22 = smov %s1261_s26  ;;  %20 = sbr.rel (!%p18_p4) target bundleno = 6 (0x6), region = 93 }
 0x35d   :  { %692 = vsyncpa [#allocation4], 1 }
 0x35e   :  { %694 = vsyncpa [#allocation4 + $0x1], 1 }
 0x35f   :  { %695 = vsyncpa [#allocation5], 1 }
 0x360   :  { %697 = vsyncpa [#allocation5 + $0x1], 1 }

</bundles_post_ra>
